<compile_context>
chip_gen: v7x
topology: tpu7x:2x2x1
jax: 0.10.0
libtpu: 0.0.40
codegen_flags: <defaults>
</compile_context>

<pallas_src>
import jax
import jax.numpy as jnp
from jax.experimental import pallas as pl
from jax.experimental.pallas import tpu as pltpu


def _copy_kernel(src_ref, dst_ref):
    # Whole-table single-block copy (VMEM -> VMEM views of the one block).
    dst_ref[...] = src_ref[...]


@jax.jit
def learnable_positional_encoder(position: jax.Array) -> jax.Array:
    """position: (seq_len, d_model) -> (1, seq_len, d_model)."""
    seq_len, d_model = position.shape
    total = seq_len * d_model

    # Pick a lane-dense 2D presentation of the table (wrapper-side reshape is
    # metadata-only / a bitcast under XLA).
    if d_model % 128 == 0:
        rows, cols = seq_len, d_model            # already lane-dense
    elif total % 128 == 0:
        rows, cols = total // 128, 128           # flatten to full 128-lane rows
    else:
        rows, cols = 1, total                    # fall back: one long row
    work = position.reshape(rows, cols)

    out2d = pl.pallas_call(
        _copy_kernel,
        out_shape=jax.ShapeDtypeStruct((rows, cols), position.dtype),
        # Whole array as a single block resident in VMEM; no grid, no tiling.
        in_specs=[pl.BlockSpec(memory_space=pltpu.MemorySpace.VMEM)],
        out_specs=pl.BlockSpec(memory_space=pltpu.MemorySpace.VMEM),
    )(work)

    # Batch dim + original layout: metadata-only reshape in the wrapper.
    return out2d.reshape(1, seq_len, d_model)


if __name__ == "__main__":
    # Module hyperparameters (small, consistent with the forward pass).
    seq_len = 8
    d_model = 32

    # Deterministic parameter initialization (stands in for torch.randn).
    key = jax.random.PRNGKey(0)
    position = jax.random.normal(key, (seq_len, d_model), dtype=jnp.float32)

    out = learnable_positional_encoder(position)
    out = jax.block_until_ready(out)

    # Sanity checks against the reference semantics.
    assert out.shape == (1, seq_len, d_model), out.shape
    assert out.dtype == position.dtype
    assert bool(jnp.allclose(out[0], position))

    print("KERNEL_OK")
</pallas_src>

<mosaic_0001>
module attributes {stable_mosaic.version = 11 : i64} {
  func.func @_copy_kernel(%arg0: memref<2x128xf32, #tpu.memory_space<vmem>>, %arg1: memref<2x128xf32, #tpu.memory_space<vmem>>) attributes {dimension_semantics = [], scalar_prefetch = 0 : i64, scratch_operands = 0 : i64, tpu.core_type = #tpu.core_type<tc>} {
    %c0 = arith.constant 0 : index
    %c0_0 = arith.constant 0 : index
    %0 = vector.load %arg0[%c0, %c0_0] : memref<2x128xf32, #tpu.memory_space<vmem>>, vector<2x128xf32>
    %c0_1 = arith.constant 0 : index
    %c0_2 = arith.constant 0 : index
    %1 = vector.load %arg1[%c0_1, %c0_2] : memref<2x128xf32, #tpu.memory_space<vmem>>, vector<2x128xf32>
    tpu.vector_store %arg1[%c0_1, %c0_2], %0 {strides = array<i32>} : memref<2x128xf32, #tpu.memory_space<vmem>>, vector<2x128xf32>,
    return
  }
}

</mosaic_0001>

<bundles_post_ra>
// kernel: learnable_positional_encoder.1
= control target key start
LH: loop header
LB: loop body
LE: loop exit
PB: predicated region body
PF: predicated region fallthrough
CT: control target
= control target key end

     0   :  { %s30_s0 = inlined_call_operand.vmem [shape: f32[2,128], index: 0, kind: input, shape index: {}]   ;;  %s31_s1 = inlined_call_operand.vmem [shape: f32[2,128], index: 1, kind: output, shape index: {}]  }
   0x1   :  { %v8_v0 = vld [vmem:[%s30_s0] sm:$0x3] }
   0x2   :  { %9 = vst [vmem:[%s31_s1] sm:$0x3] %v8_v0 }

</bundles_post_ra>
